<compile_context>
chip_gen: v7x
topology: tpu7x:2x2x1
jax: 0.10.0
libtpu: 0.0.40
codegen_flags: <defaults>
</compile_context>

<pallas_src>
import functools

import jax
import jax.numpy as jnp
from jax.experimental import pallas as pl
from jax.experimental.pallas import tpu as pltpu

_LANES = 128
_SUBLANES = 8


def _round_up(x, m):
    return ((x + m - 1) // m) * m


def _block_partial_sum(pred_ref, target_ref, *, block_rows, chunk_rows,
                       rows=None, row_offset=None):
    """Sum |pred - target| over one (block_rows, 128) block -> (8, 128) tile.

    Works chunk-by-chunk so f32 temporaries stay <= chunk_rows*512 B even for
    multi-MiB input blocks.  When `rows`/`row_offset` are given, rows with
    global index >= rows are masked to zero (ragged last block, or the fully
    out-of-range block produced by an uneven 2-way split).
    """
    num_chunks = block_rows // chunk_rows

    def one_chunk(c, acc):
        start = pl.multiple_of(c * chunk_rows, chunk_rows)
        p = pred_ref[pl.ds(start, chunk_rows), :].astype(jnp.float32)
        t = target_ref[pl.ds(start, chunk_rows), :].astype(jnp.float32)
        d = jnp.abs(p - t)
        if row_offset is not None:
            r = row_offset + start + jax.lax.broadcasted_iota(jnp.int32, d.shape, 0)
            d = jnp.where(r < rows, d, jnp.float32(0.0))
        # (chunk,128) -> (chunk//8, 8, 128); leading-axis sum is a pure VALU
        # vreg add-tree, no XLU cross-lane work, no block-shaped accumulator.
        return acc + d.reshape(chunk_rows // _SUBLANES, _SUBLANES, _LANES).sum(axis=0)

    return jax.lax.fori_loop(0, num_chunks, one_chunk,
                             jnp.zeros((_SUBLANES, _LANES), jnp.float32),
                             unroll=True)


def _l1_sum_kernel(pred_ref, target_ref, out_ref, acc_ref, *,
                   rows, block_rows, chunk_rows, blocks_per_split, need_mask):
    s = pl.program_id(0)            # split axis ("parallel": megacore / 2 TCs)
    j = pl.program_id(1)            # reduction axis ("arbitrary")

    @pl.when(j == 0)
    def _init():
        acc_ref[...] = jnp.zeros_like(acc_ref)

    if need_mask:
        b = s * blocks_per_split + j              # global block index
        is_full = (b + 1) * block_rows <= rows    # block fully in-bounds?

        @pl.when(is_full)
        def _full():
            acc_ref[...] += _block_partial_sum(
                pred_ref, target_ref,
                block_rows=block_rows, chunk_rows=chunk_rows)

        @pl.when(jnp.logical_not(is_full))
        def _ragged():
            # Partial last block, or the clamped out-of-range block of an
            # uneven split (mask is all-zero there).
            acc_ref[...] += _block_partial_sum(
                pred_ref, target_ref,
                block_rows=block_rows, chunk_rows=chunk_rows,
                rows=rows, row_offset=b * block_rows)
    else:
        acc_ref[...] += _block_partial_sum(
            pred_ref, target_ref,
            block_rows=block_rows, chunk_rows=chunk_rows)

    @pl.when(j == pl.num_programs(1) - 1)
    def _finish():
        out_ref[...] = acc_ref[...][None]


def l1_loss(pred, target, *, block_rows=8192, min_pallas_elems=1 << 20):
    """Equivalent of F.l1_loss(pred, target, reduction='mean')."""
    assert pred.shape == target.shape, "pred/target must have the same shape"
    n = pred.size
    if n == 0:
        return jnp.float32(jnp.nan)   # matches torch semantics on empty input

    pf = pred.reshape(-1)
    tf = target.reshape(-1)

    # Small-n fast path: launch + per-step overhead dominates tiny reductions;
    # XLA fuses the elementwise+reduce fine at these sizes.
    if n < min_pallas_elems:
        return jnp.mean(jnp.abs(pf.astype(jnp.float32) - tf.astype(jnp.float32)))

    n128 = (n // _LANES) * _LANES          # lane-aligned prefix (in-kernel)
    tail = n - n128                        # <128 leftover elements (plain JAX)
    total = jnp.float32(0.0)

    if n128 > 0:
        rows = n128 // _LANES

        # Packed sublane tile: f32 -> 8 rows, bf16 -> 16, int8/fp8 -> 32.
        def _pack(dt):
            return _SUBLANES * max(1, 4 // dt.itemsize)
        pack = max(_pack(pf.dtype), _pack(tf.dtype))

        br = min(block_rows, _round_up(rows, pack))
        br = max(pack, _round_up(br, pack))
        if br > 1024:
            br = (br // 1024) * 1024       # keep br a multiple of the chunk
        chunk = min(br, 1024)

        num_blocks = pl.cdiv(rows, br)
        # Unconditional 2-way split of the block range so v7x's two
        # TensorCores (and megacore parts) each stream half the rows.
        num_splits = 2 if num_blocks >= 2 else 1
        blocks_per_split = pl.cdiv(num_blocks, num_splits)
        need_mask = (rows % br != 0) or (num_splits * blocks_per_split != num_blocks)

        if tail:
            # TODO(synk): for ragged inputs this aligned-prefix slice may be
            # materialized by XLA before the custom call; aligned inputs (the
            # common case) take the copy-free reshape below.
            p2 = pf[:n128].reshape(rows, _LANES)
            t2 = tf[:n128].reshape(rows, _LANES)
        else:
            p2 = pf.reshape(rows, _LANES)   # pure reshape, no copy
            t2 = tf.reshape(rows, _LANES)

        kernel = functools.partial(
            _l1_sum_kernel,
            rows=rows, block_rows=br, chunk_rows=chunk,
            blocks_per_split=blocks_per_split, need_mask=need_mask)

        last_block = num_blocks - 1
        in_map = lambda s, j: (jnp.minimum(s * blocks_per_split + j, last_block), 0)

        bytes_accessed = (n128 * (p2.dtype.itemsize + t2.dtype.itemsize)
                          + num_splits * _SUBLANES * _LANES * 4)

        partial = pl.pallas_call(
            kernel,
            out_shape=jax.ShapeDtypeStruct((num_splits, _SUBLANES, _LANES),
                                           jnp.float32),
            grid_spec=pltpu.PrefetchScalarGridSpec(
                num_scalar_prefetch=0,
                grid=(num_splits, blocks_per_split),
                in_specs=[
                    pl.BlockSpec((br, _LANES), in_map),
                    pl.BlockSpec((br, _LANES), in_map),
                ],
                out_specs=pl.BlockSpec((1, _SUBLANES, _LANES),
                                       lambda s, j: (s, 0, 0)),
                scratch_shapes=[pltpu.VMEM((_SUBLANES, _LANES), jnp.float32)],
            ),
            compiler_params=pltpu.CompilerParams(
                dimension_semantics=("parallel", "arbitrary"),
                vmem_limit_bytes=32 * 1024 * 1024,
            ),
            cost_estimate=pl.CostEstimate(
                flops=3 * n128, transcendentals=0,
                bytes_accessed=bytes_accessed),
        )(p2, t2)

        total = total + jnp.sum(partial)

    if tail:
        total = total + jnp.sum(jnp.abs(pf[n128:].astype(jnp.float32)
                                        - tf[n128:].astype(jnp.float32)))

    return total / jnp.float32(n)


if __name__ == "__main__":
    key = jax.random.PRNGKey(0)
    k1, k2, k3, k4, k5, k6 = jax.random.split(key, 6)

    # Primary case: NCHW [2, 4, 16, 16] (128-aligned element count); force the
    # Pallas path despite the small size so the kernel itself is exercised.
    pred = jax.random.normal(k1, (2, 4, 16, 16), dtype=jnp.float32)
    target = jax.random.normal(k2, (2, 4, 16, 16), dtype=jnp.float32)
    loss = l1_loss(pred, target, min_pallas_elems=0)
    jax.block_until_ready(loss)
    ref = jnp.mean(jnp.abs(pred - target))
    assert jnp.allclose(loss, ref, rtol=1e-4, atol=1e-5), (loss, ref)

    # Ragged case: exercises the unconditional 2-way split (odd trailing block),
    # the pl.when-gated row mask, and the <128-element tail path (60*128 + 37).
    p2 = jax.random.normal(k3, (7717,), dtype=jnp.float32)
    t2 = jax.random.normal(k4, (7717,), dtype=jnp.float32)
    loss2 = l1_loss(p2, t2, block_rows=8, min_pallas_elems=0)
    jax.block_until_ready(loss2)
    ref2 = jnp.mean(jnp.abs(p2 - t2))
    assert jnp.allclose(loss2, ref2, rtol=1e-4, atol=1e-5), (loss2, ref2)

    # Default-config path: 2M elements -> block_rows=8192, 2 blocks, 2-way
    # split, no masking (also validates the big-block VMEM budget compiles).
    p3 = jax.random.normal(k5, (2048, 1024), dtype=jnp.float32)
    t3 = jax.random.normal(k6, (2048, 1024), dtype=jnp.float32)
    loss3 = l1_loss(p3, t3)
    jax.block_until_ready(loss3)
    ref3 = jnp.mean(jnp.abs(p3 - t3))
    assert jnp.allclose(loss3, ref3, rtol=1e-4, atol=1e-5), (loss3, ref3)

    # Small-n fast path (pure JAX, no pallas_call).
    loss4 = l1_loss(pred, target)
    jax.block_until_ready(loss4)
    assert jnp.allclose(loss4, ref, rtol=1e-4, atol=1e-5), (loss4, ref)

    print("KERNEL_OK")
</pallas_src>

<mosaic_0001>
module attributes {stable_mosaic.version = 11 : i64} {
  func.func @_l1_sum_kernel(%arg0: i32, %arg1: i32, %arg2: memref<16x128xf32, #tpu.memory_space<vmem>>, %arg3: memref<16x128xf32, #tpu.memory_space<vmem>>, %arg4: memref<1x8x128xf32, #tpu.memory_space<vmem>>, %arg5: memref<8x128xf32, #tpu.memory_space<vmem>>) attributes {dimension_semantics = [#tpu.dimension_semantics<parallel>, #tpu.dimension_semantics<arbitrary>], iteration_bounds = array<i64: 1, 1>, scalar_prefetch = 0 : i64, scratch_operands = 1 : i64, tpu.core_type = #tpu.core_type<tc>, window_params = [{transform_indices = @transform_0, window_bounds = array<i64: 16, 128>}, {transform_indices = @transform_1, window_bounds = array<i64: 16, 128>}, {transform_indices = @transform_2, window_bounds = array<i64: 1, 8, 128>}]} {
    %c0_i32 = arith.constant 0 : i32
    %0 = arith.cmpi eq, %arg1, %c0_i32 : i32
    %1 = arith.extui %0 : i1 to i32
    %c0_i32_0 = arith.constant 0 : i32
    %2 = arith.cmpi ne, %1, %c0_i32_0 : i32
    scf.if %2 {
      %cst_10 = arith.constant 0.000000e+00 : f32
      %21 = vector.broadcast %cst_10 : f32 to vector<8x128xf32>
      %c0_11 = arith.constant 0 : index
      %c0_12 = arith.constant 0 : index
      %22 = vector.load %arg5[%c0_11, %c0_12] : memref<8x128xf32, #tpu.memory_space<vmem>>, vector<8x128xf32>
      tpu.vector_store %arg5[%c0_11, %c0_12], %21 {strides = array<i32>} : memref<8x128xf32, #tpu.memory_space<vmem>>, vector<8x128xf32>,
    } else {
    }
    %c0 = arith.constant 0 : index
    %c0_1 = arith.constant 0 : index
    %3 = vector.load %arg5[%c0, %c0_1] : memref<8x128xf32, #tpu.memory_space<vmem>>, vector<8x128xf32>
    %cst = arith.constant 0.000000e+00 : f32
    %4 = vector.broadcast %cst : f32 to vector<8x128xf32>
    %c0_i32_2 = arith.constant 0 : i32
    %c16_i32 = arith.constant 16 : i32
    %5 = arith.muli %c0_i32_2, %c16_i32 : i32
    %6 = tpu.assume_multiple %5, 16 : i32
    %7 = arith.index_cast %6 : i32 to index
    %c0_3 = arith.constant 0 : index
    %8 = vector.load %arg2[%7, %c0_3] : memref<16x128xf32, #tpu.memory_space<vmem>>, vector<16x128xf32>
    %9 = arith.index_cast %6 : i32 to index
    %c0_4 = arith.constant 0 : index
    %10 = vector.load %arg3[%9, %c0_4] : memref<16x128xf32, #tpu.memory_space<vmem>>, vector<16x128xf32>
    %11 = arith.subf %8, %10 : vector<16x128xf32>
    %12 = math.absf %11 : vector<16x128xf32>
    %13 = vector.shape_cast %12 : vector<16x128xf32> to vector<2x8x128xf32>
    %cst_5 = arith.constant dense<0.000000e+00> : vector<8x128xf32>
    %14 = vector.multi_reduction <add>, %13, %cst_5 [0] : vector<2x8x128xf32> to vector<8x128xf32>
    %15 = arith.addf %4, %14 : vector<8x128xf32>
    %c1_i32 = arith.constant 1 : i32
    %16 = arith.addf %3, %15 : vector<8x128xf32>
    %c0_6 = arith.constant 0 : index
    %c0_7 = arith.constant 0 : index
    %17 = vector.load %arg5[%c0_6, %c0_7] : memref<8x128xf32, #tpu.memory_space<vmem>>, vector<8x128xf32>
    tpu.vector_store %arg5[%c0_6, %c0_7], %16 {strides = array<i32>} : memref<8x128xf32, #tpu.memory_space<vmem>>, vector<8x128xf32>,
    %c0_i32_8 = arith.constant 0 : i32
    %18 = arith.cmpi eq, %arg1, %c0_i32_8 : i32
    %19 = arith.extui %18 : i1 to i32
    %c0_i32_9 = arith.constant 0 : i32
    %20 = arith.cmpi ne, %19, %c0_i32_9 : i32
    scf.if %20 {
      %c0_10 = arith.constant 0 : index
      %c0_11 = arith.constant 0 : index
      %21 = vector.load %arg5[%c0_10, %c0_11] : memref<8x128xf32, #tpu.memory_space<vmem>>, vector<8x128xf32>
      %22 = vector.shape_cast %21 : vector<8x128xf32> to vector<1x8x128xf32>
      %c0_12 = arith.constant 0 : index
      %c0_13 = arith.constant 0 : index
      %c0_14 = arith.constant 0 : index
      %23 = vector.load %arg4[%c0_12, %c0_13, %c0_14] : memref<1x8x128xf32, #tpu.memory_space<vmem>>, vector<1x8x128xf32>
      tpu.vector_store %arg4[%c0_12, %c0_13, %c0_14], %22 {strides = array<i32>} : memref<1x8x128xf32, #tpu.memory_space<vmem>>, vector<1x8x128xf32>,
    } else {
    }
    return
  }
  func.func @transform_0(%arg0: i32, %arg1: i32) -> (i32, i32) {
    %c1_i32 = arith.constant 1 : i32
    %0 = arith.muli %arg0, %c1_i32 : i32
    %1 = arith.addi %0, %arg1 : i32
    %c0_i32 = arith.constant 0 : i32
    %2 = arith.minsi %1, %c0_i32 : i32
    %c0_i32_0 = arith.constant 0 : i32
    %c0_i32_1 = arith.constant 0 : i32
    return %2, %c0_i32_0 : i32, i32
  }
  func.func @transform_1(%arg0: i32, %arg1: i32) -> (i32, i32) {
    %c1_i32 = arith.constant 1 : i32
    %0 = arith.muli %arg0, %c1_i32 : i32
    %1 = arith.addi %0, %arg1 : i32
    %c0_i32 = arith.constant 0 : i32
    %2 = arith.minsi %1, %c0_i32 : i32
    %c0_i32_0 = arith.constant 0 : i32
    %c0_i32_1 = arith.constant 0 : i32
    return %2, %c0_i32_0 : i32, i32
  }
  func.func @transform_2(%arg0: i32, %arg1: i32) -> (i32, i32, i32) {
    %c0_i32 = arith.constant 0 : i32
    %c0_i32_0 = arith.constant 0 : i32
    %c0_i32_1 = arith.constant 0 : i32
    return %arg0, %c0_i32, %c0_i32_0 : i32, i32, i32
  }
}

</mosaic_0001>

<bundles_post_ra>
// kernel: tpu_custom_call.1
= control target key start
LH: loop header
LB: loop body
LE: loop exit
PB: predicated region body
PF: predicated region fallthrough
CT: control target
= control target key end

     0   :  { %7 = vsyncpa [#allocation4], 0  ;;  %s236_s0 = inlined_call_operand.hbm [shape: f32[16,128], index: 0, kind: input, shape index: {}]   ;;  %s237_s1 = inlined_call_operand.hbm [shape: f32[16,128], index: 1, kind: input, shape index: {}]   ;;  %s238_s2 = inlined_call_operand.hbm [shape: f32[1,8,128], index: 2, kind: output, shape index: {}]  }
   0x1   :  { %8 = vsyncpa [#allocation7], 0 }
   0x2   :  { %9 = vsyncpa [#allocation5], 0  ;;  %s180_s9 = smov [#allocation3]   ;;  %s108_s13 = scalar_lea.hbm %s236_s0, 256 }
   0x3   :  { %s21_s10 = sshll.u32 %s180_s9, 4  ;;  %p109_p0 = scmp.ne.s32.totalorder %s236_s0, %s108_s13  ;;  %s22_s10 = int_to_ptr.vmem [resolvable:$true] %s21_s10 }
   0x4   :  { %p112_p1 = scmp.lt.u32.totalorder %s108_s13, %s236_s0 }
   0x6   :  { %p114_p2 = pnand %p112_p1, %p109_p0 }
   0x8   :  { %117 = shalt.err (!%p114_p2)
}
   0x9   :  { %s118_s18 = scalar_lea.vmem %s22_s10, 256  ;;  %p123_p4 = scmp.lt.s32.totalorder %s22_s10, %s22_s10 }
   0xa   :  { %p119_p3 = scmp.ne.s32.totalorder %s22_s10, %s118_s18  ;;  %p124_p5 = scmp.lt.s32.totalorder %s118_s18, %s118_s18 }
   0xc   :  { %p125_p6 = por %p124_p5, %p123_p4 }
   0xe   :  { %p126_p7 = pnand %p125_p6, %p119_p3 }
  0x10   :  { %129 = shalt.err (!%p126_p7)
}
  0x11   :  { %s181_s19 = smov 128   ;;  %s182_s20 = smov 8  }
  0x12   :  { %27 = dma.hbm_to_vmem [thread:$0]  %s236_s0, 256, %s22_s10, [#allocation4], %s181_s19, %s181_s19, %s182_s20  }
  0x13   :  { %s183_s23 = smov [#allocation6]   ;;  %s130_s27 = scalar_lea.hbm %s237_s1, 256 }
  0x14   :  { %s39_s24 = sshll.u32 %s183_s23, 4  ;;  %p131_p8 = scmp.ne.s32.totalorder %s237_s1, %s130_s27  ;;  %s40_s24 = int_to_ptr.vmem [resolvable:$true] %s39_s24 }
  0x15   :  { %p134_p9 = scmp.lt.u32.totalorder %s130_s27, %s237_s1 }
  0x17   :  { %p136_p10 = pnand %p134_p9, %p131_p8 }
  0x19   :  { %139 = shalt.err (!%p136_p10)
}
  0x1a   :  { %s140_s4 = scalar_lea.vmem %s40_s24, 256  ;;  %p145_p12 = scmp.lt.s32.totalorder %s40_s24, %s40_s24 }
  0x1b   :  { %p141_p11 = scmp.ne.s32.totalorder %s40_s24, %s140_s4  ;;  %p146_p13 = scmp.lt.s32.totalorder %s140_s4, %s140_s4 }
  0x1d   :  { %p147_p0 = por %p146_p13, %p145_p12 }
  0x1f   :  { %p148_p1 = pnand %p147_p0, %p141_p11 }
  0x21   :  { %151 = shalt.err (!%p148_p1)
}
  0x22   :  { %45 = dma.hbm_to_vmem [thread:$0]  %s237_s1, 256, %s40_s24, [#allocation7], %s181_s19, %s181_s19, %s182_s20  }
  0x23   :  { %174 = dma.done.wait [#allocation4], 256  }
  0x24   :  { %175 = vsyncadd [#allocation4], 4294967040 }
  0x25   :  { %176 = dma.done.wait [#allocation7], 256  }
  0x26   :  { %177 = vsyncadd [#allocation7], 4294967040  ;;  %v66_v0 = vld [vmem:[#allocation3] sm:$0xff]  ;;  %v67_v1 = vld [vmem:[#allocation3 + $0x8] sm:$0xff]  ;;  %s184_s6 = smov [#allocation8]  }
  0x27   :  { %v68_v2 = vld [vmem:[#allocation6] sm:$0xff]  ;;  %v69_v3 = vld [vmem:[#allocation6 + $0x8] sm:$0xff]  ;;  %s89_s7 = sshll.u32 %s184_s6, 4  ;;  %s90_s7 = int_to_ptr.vmem [resolvable:$true] %s89_s7 }
  0x28   :  { %v70_v4 = vsub.f32 %v66_v0, %v68_v2  ;;  %v71_v5 = vsub.f32 %v67_v1, %v69_v3  ;;  %s152_s8 = scalar_lea.vmem %s90_s7, 128  ;;  %p157_p3 = scmp.lt.s32.totalorder %s90_s7, %s90_s7 }
  0x29   :  { %p153_p2 = scmp.ne.s32.totalorder %s90_s7, %s152_s8  ;;  %p158_p4 = scmp.lt.s32.totalorder %s152_s8, %s152_s8 }
  0x2a   :  { %v72_v6 = vand.u32 2147483647, %v70_v4  ;;  %v73_v7 = vand.u32 2147483647, %v71_v5 }
  0x2b   :  { %p159_p5 = por %p158_p4, %p157_p3 }
  0x2c   :  { %v74_v8 = vadd.f32 %v73_v7, %v72_v6 }
  0x2d   :  { %p160_p6 = pnand %p159_p5, %p153_p2 }
  0x2e   :  { %82 = vst [vmem:[#allocation8] sm:$0xff] %v74_v8 }
  0x2f   :  { %163 = shalt.err (!%p160_p6)
}
  0x30   :  { %s164_s10 = scalar_lea.hbm %s238_s2, 128 }
  0x31   :  { %p165_p7 = scmp.ne.s32.totalorder %s238_s2, %s164_s10  ;;  %p168_p8 = scmp.lt.u32.totalorder %s164_s10, %s238_s2 }
  0x33   :  { %p170_p9 = pnand %p168_p8, %p165_p7 }
  0x35   :  { %173 = shalt.err (!%p170_p9)
}
  0x36   :  { %92 = dma.vmem_to_hbm [thread:$0]  %s90_s7, 128, %s238_s2, [#allocation5]  }
  0x37   :  { %178 = dma.done.wait [#allocation5], 128  }
  0x38   :  { %179 = vsyncadd [#allocation5], 4294967168 }
  0x39   :  { %96 = vsyncpa [#allocation4], 1 }
  0x3a   :  { %97 = vsyncpa [#allocation7], 1 }
  0x3b   :  { %98 = vsyncpa [#allocation5], 1 }

</bundles_post_ra>
